<compile_context>
chip_gen: v6e
topology: v6e:2x2x1
jax: 0.10.0
libtpu: 0.0.40
codegen_flags: <defaults>
</compile_context>

<pallas_src>
import functools

import jax
import jax.numpy as jnp
from jax.experimental import pallas as pl
from jax.experimental.pallas import tpu as pltpu

LEAKY_ALPHA = 0.2
MASK_FILL = -999.0


def _gat_fused_kernel(x_ref, wall_ref, wscore_ref, btile_ref, adj_ref,
                      hwt_ref, hb_ref, out_ref, *, att_head, out_dim,
                      leaky_alpha):
    """One batch tile: every attention head + gating/ELU/blend, fully in VMEM."""
    x = x_ref[0]                         # (N, in_dim) f32
    adj = adj_ref[0]                     # (N, N)     f32, 0/1
    xb = x.astype(jnp.bfloat16)

    # All-head projection on the MXU: (N, in_dim) @ (in_dim, H*D) -> (N, H*D).
    h_all = jnp.dot(xb, wall_ref[...], preferred_element_type=jnp.float32)
    th = jnp.tanh(h_all)

    # Per-head src/dst scores as one matmul against the block-diagonal score
    # matrix: columns [0:H] are attn_src, columns [H:2H] are attn_dst.
    scores = jnp.dot(th, wscore_ref[...], preferred_element_type=jnp.float32)

    # PyTorch: mask = (1 - adj).bool(); masked_fill_(mask, -999)  <=>  keep adj == 1
    keep = adj == 1.0

    feats = []
    for hd in range(att_head):           # att_head is small & static -> unrolled
        a_src = scores[:, hd:hd + 1]                         # (N, 1)
        a_dst = scores[:, att_head + hd:att_head + hd + 1]   # (N, 1)
        a = a_src + a_dst.T                                  # (N, N)
        a = jnp.where(a > 0, a, leaky_alpha * a)             # leaky_relu
        a = jnp.where(keep, a, MASK_FILL)                    # masked_fill_(-999)
        # softmax over the last dim (f32 math, approx reciprocal on the EUP)
        a = a - jnp.max(a, axis=-1, keepdims=True)
        e = jnp.exp(a)
        p = e * pl.reciprocal(jnp.sum(e, axis=-1, keepdims=True), approx=True)
        h_hd = h_all[:, hd * out_dim:(hd + 1) * out_dim]     # (N, D)
        feats.append(jnp.dot(p.astype(jnp.bfloat16), h_hd.astype(jnp.bfloat16),
                             preferred_element_type=jnp.float32))

    # Head-major concat == PyTorch transpose(1,2).contiguous().view(B, N, H*D);
    # the per-head bias b is added once via the H-times-tiled bias row.
    feat_cat = jnp.concatenate(feats, axis=-1) + btile_ref[...]    # (N, H*D)

    # Gate: sigmoid(x @ H^T + b_H) = 0.5 * (tanh(0.5 * z) + 1)  (EUP tanh path)
    logits = (jnp.dot(xb, hwt_ref[...], preferred_element_type=jnp.float32)
              + hb_ref[...])
    gate = 0.5 * (jnp.tanh(0.5 * logits) + 1.0)

    # ELU(alpha=1), then blend with the residual input.
    fo = jnp.where(feat_cat > 0, feat_cat, jnp.exp(feat_cat) - 1.0)
    out_ref[0] = gate * fo + (1.0 - gate) * x


def gat_forward(feat_in, adj, params, *, leaky_alpha=LEAKY_ALPHA):
    """Forward pass of GraphAttentionLayer (inference mode)."""
    W, b, w_src, w_dst, Hw, Hb = (params["W"], params["b"], params["w_src"],
                                  params["w_dst"], params["Hw"], params["Hb"])
    batch, N, in_dim = feat_in.shape
    att_head, _, out_dim = W.shape
    assert in_dim == att_head * out_dim

    # --- wrapper-side parameter plumbing (tiny, one-time) ---
    # W_all[:, h*D:(h+1)*D] == W[h]  => one projection matmul covers every head.
    W_all = jnp.transpose(W, (1, 0, 2)).reshape(in_dim, att_head * out_dim)
    W_all_bf = W_all.astype(jnp.bfloat16)

    # Block-diagonal score matrix (H*D, 2H): th @ Wscore = [attn_src | attn_dst].
    wsrc2 = w_src[..., 0]                                   # (H, D)
    wdst2 = w_dst[..., 0]                                   # (H, D)
    eye_h = jnp.eye(att_head, dtype=jnp.float32)            # (H, H)
    wsrc_m = (wsrc2[:, :, None] * eye_h[:, None, :]).reshape(in_dim, att_head)
    wdst_m = (wdst2[:, :, None] * eye_h[:, None, :]).reshape(in_dim, att_head)
    w_score = jnp.concatenate([wsrc_m, wdst_m], axis=1)     # (H*D, 2H)

    b_tiled = jnp.tile(b.reshape(1, out_dim), (1, att_head))    # (1, H*D)
    hwt_bf = Hw.T.astype(jnp.bfloat16)                          # x @ Hw^T as plain matmul
    hb2 = Hb.reshape(1, in_dim)
    adj_f = adj.astype(jnp.float32)

    kernel = functools.partial(_gat_fused_kernel, att_head=att_head,
                               out_dim=out_dim, leaky_alpha=leaky_alpha)

    out = pl.pallas_call(
        kernel,
        out_shape=jax.ShapeDtypeStruct((batch, N, in_dim), jnp.float32),
        grid=(batch,),
        in_specs=[
            pl.BlockSpec((1, N, in_dim), lambda bi: (bi, 0, 0)),              # feat_in
            pl.BlockSpec((in_dim, att_head * out_dim), lambda bi: (0, 0)),    # W_all (bf16)
            pl.BlockSpec((in_dim, 2 * att_head), lambda bi: (0, 0)),          # Wscore
            pl.BlockSpec((1, in_dim), lambda bi: (0, 0)),                     # b tiled
            pl.BlockSpec((1, N, N), lambda bi: (bi, 0, 0)),                   # adj
            pl.BlockSpec((in_dim, in_dim), lambda bi: (0, 0)),                # Hw^T (bf16)
            pl.BlockSpec((1, in_dim), lambda bi: (0, 0)),                     # Hb
        ],
        out_specs=pl.BlockSpec((1, N, in_dim), lambda bi: (bi, 0, 0)),        # lane-dense
        compiler_params=pltpu.CompilerParams(
            dimension_semantics=("parallel",)),   # batch axis shards across v7x TCs
    )(feat_in, W_all_bf, w_score, b_tiled, adj_f, hwt_bf, hb2)

    return out


def init_params(key, att_head, in_dim, out_dim):
    """Deterministic synthetic parameter init (xavier-like scaling)."""
    k1, k2, k3, k4, k5 = jax.random.split(key, 5)

    def xavier_uniform(k, shape, fan_in, fan_out):
        bound = jnp.sqrt(6.0 / (fan_in + fan_out))
        return jax.random.uniform(k, shape, jnp.float32, -bound, bound)

    W = xavier_uniform(k1, (att_head, in_dim, out_dim), in_dim, out_dim)
    b = jnp.zeros((out_dim,), jnp.float32)
    w_src = xavier_uniform(k2, (att_head, out_dim, 1), out_dim, 1)
    w_dst = xavier_uniform(k3, (att_head, out_dim, 1), out_dim, 1)
    # nn.Linear(in_dim, in_dim): weight xavier_normal_; bias uniform(-1/sqrt, 1/sqrt)
    std = jnp.sqrt(2.0 / (in_dim + in_dim))
    Hw = std * jax.random.normal(k4, (in_dim, in_dim), jnp.float32)
    Hb = jax.random.uniform(k5, (in_dim,), jnp.float32,
                            -1.0 / jnp.sqrt(in_dim), 1.0 / jnp.sqrt(in_dim))
    return {"W": W, "b": b, "w_src": w_src, "w_dst": w_dst, "Hw": Hw, "Hb": Hb}


if __name__ == "__main__":
    # small shapes consistent with the module: in_dim == att_head * out_dim
    batch, N = 2, 8
    att_head, out_dim = 4, 8
    in_dim = att_head * out_dim  # 32
    dp_gnn = 0.1  # unused at inference

    key = jax.random.PRNGKey(0)
    kp, kx, ka = jax.random.split(key, 3)

    params = init_params(kp, att_head, in_dim, out_dim)
    feat_in = jax.random.normal(kx, (batch, N, in_dim), jnp.float32)

    # deterministic 0/1 adjacency with self-loops
    adj = (jax.random.uniform(ka, (batch, N, N)) > 0.5).astype(jnp.float32)
    eye = jnp.eye(N, dtype=jnp.float32)[None]
    adj = jnp.clip(adj + eye, 0.0, 1.0)

    out = gat_forward(feat_in, adj, params)
    out = jax.block_until_ready(out)
    assert out.shape == (batch, N, in_dim)
    assert jnp.all(jnp.isfinite(out))
    print("KERNEL_OK")
</pallas_src>

<mosaic_0001>
module attributes {stable_mosaic.version = 11 : i64} {
  func.func @_gat_fused_kernel(%arg0: i32, %arg1: memref<1x8x32xf32, #tpu.memory_space<vmem>>, %arg2: memref<32x32xbf16, #tpu.memory_space<vmem>>, %arg3: memref<32x8xf32, #tpu.memory_space<vmem>>, %arg4: memref<1x32xf32, #tpu.memory_space<vmem>>, %arg5: memref<1x8x8xf32, #tpu.memory_space<vmem>>, %arg6: memref<32x32xbf16, #tpu.memory_space<vmem>>, %arg7: memref<1x32xf32, #tpu.memory_space<vmem>>, %arg8: memref<1x8x32xf32, #tpu.memory_space<vmem>>) attributes {dimension_semantics = [#tpu.dimension_semantics<parallel>], iteration_bounds = array<i64: 2>, scalar_prefetch = 0 : i64, scratch_operands = 0 : i64, tpu.core_type = #tpu.core_type<tc>, window_params = [{transform_indices = @transform_0, window_bounds = array<i64: 1, 8, 32>}, {pipeline_mode = #tpu.pipeline_mode<synchronous>, transform_indices = @transform_1, window_bounds = array<i64: 32, 32>}, {pipeline_mode = #tpu.pipeline_mode<synchronous>, transform_indices = @transform_2, window_bounds = array<i64: 32, 8>}, {pipeline_mode = #tpu.pipeline_mode<synchronous>, transform_indices = @transform_3, window_bounds = array<i64: 1, 32>}, {transform_indices = @transform_4, window_bounds = array<i64: 1, 8, 8>}, {pipeline_mode = #tpu.pipeline_mode<synchronous>, transform_indices = @transform_5, window_bounds = array<i64: 32, 32>}, {pipeline_mode = #tpu.pipeline_mode<synchronous>, transform_indices = @transform_6, window_bounds = array<i64: 1, 32>}, {transform_indices = @transform_7, window_bounds = array<i64: 1, 8, 32>}]} {
    %c0 = arith.constant 0 : index
    %c0_0 = arith.constant 0 : index
    %c0_1 = arith.constant 0 : index
    %0 = vector.load %arg1[%c0, %c0_0, %c0_1] : memref<1x8x32xf32, #tpu.memory_space<vmem>>, vector<1x8x32xf32>
    %1 = vector.shape_cast %0 : vector<1x8x32xf32> to vector<8x32xf32>
    %c0_2 = arith.constant 0 : index
    %c0_3 = arith.constant 0 : index
    %c0_4 = arith.constant 0 : index
    %2 = vector.load %arg5[%c0_2, %c0_3, %c0_4] : memref<1x8x8xf32, #tpu.memory_space<vmem>>, vector<1x8x8xf32>
    %3 = vector.shape_cast %2 : vector<1x8x8xf32> to vector<8x8xf32>
    %4 = arith.truncf %1 : vector<8x32xf32> to vector<8x32xbf16>
    %c0_5 = arith.constant 0 : index
    %c0_6 = arith.constant 0 : index
    %5 = vector.load %arg2[%c0_5, %c0_6] : memref<32x32xbf16, #tpu.memory_space<vmem>>, vector<32x32xbf16>
    %cst = arith.constant dense<0.000000e+00> : vector<8x32xf32>
    %6 = tpu.matmul %4, %5, %cst {dimension_numbers = #tpu.dot_dimension_numbers<[1], [0], [0], [1], [0, 0, 1, 1], [], []>} : vector<8x32xbf16>, vector<32x32xbf16>, vector<8x32xf32> -> vector<8x32xf32>
    %7 = math.tanh %6 : vector<8x32xf32>
    %c0_7 = arith.constant 0 : index
    %c0_8 = arith.constant 0 : index
    %8 = vector.load %arg3[%c0_7, %c0_8] : memref<32x8xf32, #tpu.memory_space<vmem>>, vector<32x8xf32>
    %cst_9 = arith.constant dense<0.000000e+00> : vector<8x8xf32>
    %9 = tpu.matmul %7, %8, %cst_9 {dimension_numbers = #tpu.dot_dimension_numbers<[1], [0], [0], [1], [0, 0, 1, 1], [], []>} : vector<8x32xf32>, vector<32x8xf32>, vector<8x8xf32> -> vector<8x8xf32>
    %cst_10 = arith.constant 1.000000e+00 : f32
    %10 = vector.broadcast %cst_10 : f32 to vector<8x8xf32>
    %11 = arith.cmpf oeq, %3, %10 : vector<8x8xf32>
    %12 = vector.extract_strided_slice %9 {offsets = [0, 0], sizes = [8, 1], strides = [1, 1]} : vector<8x8xf32> to vector<8x1xf32>
    %13 = vector.extract_strided_slice %9 {offsets = [0, 4], sizes = [8, 1], strides = [1, 1]} : vector<8x8xf32> to vector<8x1xf32>
    %14 = tpu.transpose %13, [1, 0] : vector<8x1xf32> -> vector<1x8xf32>
    %15 = vector.broadcast %12 : vector<8x1xf32> to vector<8x8xf32>
    %16 = vector.broadcast %14 : vector<1x8xf32> to vector<8x8xf32>
    %17 = arith.addf %15, %16 : vector<8x8xf32>
    %cst_11 = arith.constant 0.000000e+00 : f32
    %18 = vector.broadcast %cst_11 : f32 to vector<8x8xf32>
    %19 = arith.cmpf ogt, %17, %18 : vector<8x8xf32>
    %cst_12 = arith.constant 2.000000e-01 : f32
    %20 = vector.broadcast %cst_12 : f32 to vector<8x8xf32>
    %21 = arith.mulf %20, %17 : vector<8x8xf32>
    %22 = arith.select %19, %17, %21 : vector<8x8xi1>, vector<8x8xf32>
    %cst_13 = arith.constant -9.990000e+02 : f32
    %23 = vector.broadcast %cst_13 : f32 to vector<8x8xf32>
    %24 = arith.select %11, %22, %23 : vector<8x8xi1>, vector<8x8xf32>
    %cst_14 = arith.constant dense<0xFF800000> : vector<8xf32>
    %25 = vector.multi_reduction <maximumf>, %24, %cst_14 [1] : vector<8x8xf32> to vector<8xf32>
    %26 = vector.shape_cast %25 : vector<8xf32> to vector<8x1xf32>
    %27 = vector.broadcast %26 : vector<8x1xf32> to vector<8x8xf32>
    %28 = arith.subf %24, %27 : vector<8x8xf32>
    %29 = math.exp %28 : vector<8x8xf32>
    %cst_15 = arith.constant dense<0.000000e+00> : vector<8xf32>
    %30 = vector.multi_reduction <add>, %29, %cst_15 [1] : vector<8x8xf32> to vector<8xf32>
    %31 = vector.shape_cast %30 : vector<8xf32> to vector<8x1xf32>
    %32 = tpu.reciprocal %31 {approx = true} : vector<8x1xf32> -> vector<8x1xf32>
    %33 = vector.broadcast %32 : vector<8x1xf32> to vector<8x8xf32>
    %34 = arith.mulf %29, %33 : vector<8x8xf32>
    %35 = vector.extract_strided_slice %6 {offsets = [0, 0], sizes = [8, 8], strides = [1, 1]} : vector<8x32xf32> to vector<8x8xf32>
    %36 = arith.truncf %34 : vector<8x8xf32> to vector<8x8xbf16>
    %37 = arith.truncf %35 : vector<8x8xf32> to vector<8x8xbf16>
    %cst_16 = arith.constant dense<0.000000e+00> : vector<8x8xf32>
    %38 = tpu.matmul %36, %37, %cst_16 {dimension_numbers = #tpu.dot_dimension_numbers<[1], [0], [0], [1], [0, 0, 1, 1], [], []>} : vector<8x8xbf16>, vector<8x8xbf16>, vector<8x8xf32> -> vector<8x8xf32>
    %39 = vector.extract_strided_slice %9 {offsets = [0, 1], sizes = [8, 1], strides = [1, 1]} : vector<8x8xf32> to vector<8x1xf32>
    %40 = vector.extract_strided_slice %9 {offsets = [0, 5], sizes = [8, 1], strides = [1, 1]} : vector<8x8xf32> to vector<8x1xf32>
    %41 = tpu.transpose %40, [1, 0] : vector<8x1xf32> -> vector<1x8xf32>
    %42 = vector.broadcast %39 : vector<8x1xf32> to vector<8x8xf32>
    %43 = vector.broadcast %41 : vector<1x8xf32> to vector<8x8xf32>
    %44 = arith.addf %42, %43 : vector<8x8xf32>
    %cst_17 = arith.constant 0.000000e+00 : f32
    %45 = vector.broadcast %cst_17 : f32 to vector<8x8xf32>
    %46 = arith.cmpf ogt, %44, %45 : vector<8x8xf32>
    %cst_18 = arith.constant 2.000000e-01 : f32
    %47 = vector.broadcast %cst_18 : f32 to vector<8x8xf32>
    %48 = arith.mulf %47, %44 : vector<8x8xf32>
    %49 = arith.select %46, %44, %48 : vector<8x8xi1>, vector<8x8xf32>
    %cst_19 = arith.constant -9.990000e+02 : f32
    %50 = vector.broadcast %cst_19 : f32 to vector<8x8xf32>
    %51 = arith.select %11, %49, %50 : vector<8x8xi1>, vector<8x8xf32>
    %cst_20 = arith.constant dense<0xFF800000> : vector<8xf32>
    %52 = vector.multi_reduction <maximumf>, %51, %cst_20 [1] : vector<8x8xf32> to vector<8xf32>
    %53 = vector.shape_cast %52 : vector<8xf32> to vector<8x1xf32>
    %54 = vector.broadcast %53 : vector<8x1xf32> to vector<8x8xf32>
    %55 = arith.subf %51, %54 : vector<8x8xf32>
    %56 = math.exp %55 : vector<8x8xf32>
    %cst_21 = arith.constant dense<0.000000e+00> : vector<8xf32>
    %57 = vector.multi_reduction <add>, %56, %cst_21 [1] : vector<8x8xf32> to vector<8xf32>
    %58 = vector.shape_cast %57 : vector<8xf32> to vector<8x1xf32>
    %59 = tpu.reciprocal %58 {approx = true} : vector<8x1xf32> -> vector<8x1xf32>
    %60 = vector.broadcast %59 : vector<8x1xf32> to vector<8x8xf32>
    %61 = arith.mulf %56, %60 : vector<8x8xf32>
    %62 = vector.extract_strided_slice %6 {offsets = [0, 8], sizes = [8, 8], strides = [1, 1]} : vector<8x32xf32> to vector<8x8xf32>
    %63 = arith.truncf %61 : vector<8x8xf32> to vector<8x8xbf16>
    %64 = arith.truncf %62 : vector<8x8xf32> to vector<8x8xbf16>
    %cst_22 = arith.constant dense<0.000000e+00> : vector<8x8xf32>
    %65 = tpu.matmul %63, %64, %cst_22 {dimension_numbers = #tpu.dot_dimension_numbers<[1], [0], [0], [1], [0, 0, 1, 1], [], []>} : vector<8x8xbf16>, vector<8x8xbf16>, vector<8x8xf32> -> vector<8x8xf32>
    %66 = vector.extract_strided_slice %9 {offsets = [0, 2], sizes = [8, 1], strides = [1, 1]} : vector<8x8xf32> to vector<8x1xf32>
    %67 = vector.extract_strided_slice %9 {offsets = [0, 6], sizes = [8, 1], strides = [1, 1]} : vector<8x8xf32> to vector<8x1xf32>
    %68 = tpu.transpose %67, [1, 0] : vector<8x1xf32> -> vector<1x8xf32>
    %69 = vector.broadcast %66 : vector<8x1xf32> to vector<8x8xf32>
    %70 = vector.broadcast %68 : vector<1x8xf32> to vector<8x8xf32>
    %71 = arith.addf %69, %70 : vector<8x8xf32>
    %cst_23 = arith.constant 0.000000e+00 : f32
    %72 = vector.broadcast %cst_23 : f32 to vector<8x8xf32>
    %73 = arith.cmpf ogt, %71, %72 : vector<8x8xf32>
    %cst_24 = arith.constant 2.000000e-01 : f32
    %74 = vector.broadcast %cst_24 : f32 to vector<8x8xf32>
    %75 = arith.mulf %74, %71 : vector<8x8xf32>
    %76 = arith.select %73, %71, %75 : vector<8x8xi1>, vector<8x8xf32>
    %cst_25 = arith.constant -9.990000e+02 : f32
    %77 = vector.broadcast %cst_25 : f32 to vector<8x8xf32>
    %78 = arith.select %11, %76, %77 : vector<8x8xi1>, vector<8x8xf32>
    %cst_26 = arith.constant dense<0xFF800000> : vector<8xf32>
    %79 = vector.multi_reduction <maximumf>, %78, %cst_26 [1] : vector<8x8xf32> to vector<8xf32>
    %80 = vector.shape_cast %79 : vector<8xf32> to vector<8x1xf32>
    %81 = vector.broadcast %80 : vector<8x1xf32> to vector<8x8xf32>
    %82 = arith.subf %78, %81 : vector<8x8xf32>
    %83 = math.exp %82 : vector<8x8xf32>
    %cst_27 = arith.constant dense<0.000000e+00> : vector<8xf32>
    %84 = vector.multi_reduction <add>, %83, %cst_27 [1] : vector<8x8xf32> to vector<8xf32>
    %85 = vector.shape_cast %84 : vector<8xf32> to vector<8x1xf32>
    %86 = tpu.reciprocal %85 {approx = true} : vector<8x1xf32> -> vector<8x1xf32>
    %87 = vector.broadcast %86 : vector<8x1xf32> to vector<8x8xf32>
    %88 = arith.mulf %83, %87 : vector<8x8xf32>
    %89 = vector.extract_strided_slice %6 {offsets = [0, 16], sizes = [8, 8], strides = [1, 1]} : vector<8x32xf32> to vector<8x8xf32>
    %90 = arith.truncf %88 : vector<8x8xf32> to vector<8x8xbf16>
    %91 = arith.truncf %89 : vector<8x8xf32> to vector<8x8xbf16>
    %cst_28 = arith.constant dense<0.000000e+00> : vector<8x8xf32>
    %92 = tpu.matmul %90, %91, %cst_28 {dimension_numbers = #tpu.dot_dimension_numbers<[1], [0], [0], [1], [0, 0, 1, 1], [], []>} : vector<8x8xbf16>, vector<8x8xbf16>, vector<8x8xf32> -> vector<8x8xf32>
    %93 = vector.extract_strided_slice %9 {offsets = [0, 3], sizes = [8, 1], strides = [1, 1]} : vector<8x8xf32> to vector<8x1xf32>
    %94 = vector.extract_strided_slice %9 {offsets = [0, 7], sizes = [8, 1], strides = [1, 1]} : vector<8x8xf32> to vector<8x1xf32>
    %95 = tpu.transpose %94, [1, 0] : vector<8x1xf32> -> vector<1x8xf32>
    %96 = vector.broadcast %93 : vector<8x1xf32> to vector<8x8xf32>
    %97 = vector.broadcast %95 : vector<1x8xf32> to vector<8x8xf32>
    %98 = arith.addf %96, %97 : vector<8x8xf32>
    %cst_29 = arith.constant 0.000000e+00 : f32
    %99 = vector.broadcast %cst_29 : f32 to vector<8x8xf32>
    %100 = arith.cmpf ogt, %98, %99 : vector<8x8xf32>
    %cst_30 = arith.constant 2.000000e-01 : f32
    %101 = vector.broadcast %cst_30 : f32 to vector<8x8xf32>
    %102 = arith.mulf %101, %98 : vector<8x8xf32>
    %103 = arith.select %100, %98, %102 : vector<8x8xi1>, vector<8x8xf32>
    %cst_31 = arith.constant -9.990000e+02 : f32
    %104 = vector.broadcast %cst_31 : f32 to vector<8x8xf32>
    %105 = arith.select %11, %103, %104 : vector<8x8xi1>, vector<8x8xf32>
    %cst_32 = arith.constant dense<0xFF800000> : vector<8xf32>
    %106 = vector.multi_reduction <maximumf>, %105, %cst_32 [1] : vector<8x8xf32> to vector<8xf32>
    %107 = vector.shape_cast %106 : vector<8xf32> to vector<8x1xf32>
    %108 = vector.broadcast %107 : vector<8x1xf32> to vector<8x8xf32>
    %109 = arith.subf %105, %108 : vector<8x8xf32>
    %110 = math.exp %109 : vector<8x8xf32>
    %cst_33 = arith.constant dense<0.000000e+00> : vector<8xf32>
    %111 = vector.multi_reduction <add>, %110, %cst_33 [1] : vector<8x8xf32> to vector<8xf32>
    %112 = vector.shape_cast %111 : vector<8xf32> to vector<8x1xf32>
    %113 = tpu.reciprocal %112 {approx = true} : vector<8x1xf32> -> vector<8x1xf32>
    %114 = vector.broadcast %113 : vector<8x1xf32> to vector<8x8xf32>
    %115 = arith.mulf %110, %114 : vector<8x8xf32>
    %116 = vector.extract_strided_slice %6 {offsets = [0, 24], sizes = [8, 8], strides = [1, 1]} : vector<8x32xf32> to vector<8x8xf32>
    %117 = arith.truncf %115 : vector<8x8xf32> to vector<8x8xbf16>
    %118 = arith.truncf %116 : vector<8x8xf32> to vector<8x8xbf16>
    %cst_34 = arith.constant dense<0.000000e+00> : vector<8x8xf32>
    %119 = tpu.matmul %117, %118, %cst_34 {dimension_numbers = #tpu.dot_dimension_numbers<[1], [0], [0], [1], [0, 0, 1, 1], [], []>} : vector<8x8xbf16>, vector<8x8xbf16>, vector<8x8xf32> -> vector<8x8xf32>
    %120 = tpu.concatenate %38, %65, %92, %119 in 1 : vector<8x8xf32>, vector<8x8xf32>, vector<8x8xf32>, vector<8x8xf32> -> vector<8x32xf32>
    %c0_35 = arith.constant 0 : index
    %c0_36 = arith.constant 0 : index
    %121 = vector.load %arg4[%c0_35, %c0_36] : memref<1x32xf32, #tpu.memory_space<vmem>>, vector<1x32xf32>
    %122 = vector.broadcast %121 : vector<1x32xf32> to vector<8x32xf32>
    %123 = arith.addf %120, %122 : vector<8x32xf32>
    %c0_37 = arith.constant 0 : index
    %c0_38 = arith.constant 0 : index
    %124 = vector.load %arg6[%c0_37, %c0_38] : memref<32x32xbf16, #tpu.memory_space<vmem>>, vector<32x32xbf16>
    %cst_39 = arith.constant dense<0.000000e+00> : vector<8x32xf32>
    %125 = tpu.matmul %4, %124, %cst_39 {dimension_numbers = #tpu.dot_dimension_numbers<[1], [0], [0], [1], [0, 0, 1, 1], [], []>} : vector<8x32xbf16>, vector<32x32xbf16>, vector<8x32xf32> -> vector<8x32xf32>
    %c0_40 = arith.constant 0 : index
    %c0_41 = arith.constant 0 : index
    %126 = vector.load %arg7[%c0_40, %c0_41] : memref<1x32xf32, #tpu.memory_space<vmem>>, vector<1x32xf32>
    %127 = vector.broadcast %126 : vector<1x32xf32> to vector<8x32xf32>
    %128 = arith.addf %125, %127 : vector<8x32xf32>
    %cst_42 = arith.constant 5.000000e-01 : f32
    %129 = vector.broadcast %cst_42 : f32 to vector<8x32xf32>
    %130 = arith.mulf %129, %128 : vector<8x32xf32>
    %131 = math.tanh %130 : vector<8x32xf32>
    %cst_43 = arith.constant 1.000000e+00 : f32
    %132 = vector.broadcast %cst_43 : f32 to vector<8x32xf32>
    %133 = arith.addf %131, %132 : vector<8x32xf32>
    %cst_44 = arith.constant 5.000000e-01 : f32
    %134 = vector.broadcast %cst_44 : f32 to vector<8x32xf32>
    %135 = arith.mulf %134, %133 : vector<8x32xf32>
    %cst_45 = arith.constant 0.000000e+00 : f32
    %136 = vector.broadcast %cst_45 : f32 to vector<8x32xf32>
    %137 = arith.cmpf ogt, %123, %136 : vector<8x32xf32>
    %138 = math.exp %123 : vector<8x32xf32>
    %cst_46 = arith.constant 1.000000e+00 : f32
    %139 = vector.broadcast %cst_46 : f32 to vector<8x32xf32>
    %140 = arith.subf %138, %139 : vector<8x32xf32>
    %141 = arith.select %137, %123, %140 : vector<8x32xi1>, vector<8x32xf32>
    %142 = arith.mulf %135, %141 : vector<8x32xf32>
    %cst_47 = arith.constant 1.000000e+00 : f32
    %143 = vector.broadcast %cst_47 : f32 to vector<8x32xf32>
    %144 = arith.subf %143, %135 : vector<8x32xf32>
    %145 = arith.mulf %144, %1 : vector<8x32xf32>
    %146 = arith.addf %142, %145 : vector<8x32xf32>
    %c0_48 = arith.constant 0 : index
    %c0_49 = arith.constant 0 : index
    %c0_50 = arith.constant 0 : index
    %147 = vector.load %arg8[%c0_48, %c0_49, %c0_50] : memref<1x8x32xf32, #tpu.memory_space<vmem>>, vector<1x8x32xf32>
    %148 = vector.shape_cast %147 : vector<1x8x32xf32> to vector<8x32xf32>
    %149 = vector.shape_cast %146 : vector<8x32xf32> to vector<1x8x32xf32>
    tpu.vector_store %arg8[%c0_48, %c0_49, %c0_50], %149 {strides = array<i32>} : memref<1x8x32xf32, #tpu.memory_space<vmem>>, vector<1x8x32xf32>,
    return
  }
  func.func @transform_0(%arg0: i32) -> (i32, i32, i32) {
    %c0_i32 = arith.constant 0 : i32
    %c0_i32_0 = arith.constant 0 : i32
    %c0_i32_1 = arith.constant 0 : i32
    return %arg0, %c0_i32, %c0_i32_0 : i32, i32, i32
  }
  func.func @transform_1(%arg0: i32) -> (i32, i32) {
    %c0_i32 = arith.constant 0 : i32
    %c0_i32_0 = arith.constant 0 : i32
    %c0_i32_1 = arith.constant 0 : i32
    return %c0_i32, %c0_i32_0 : i32, i32
  }
  func.func @transform_2(%arg0: i32) -> (i32, i32) {
    %c0_i32 = arith.constant 0 : i32
    %c0_i32_0 = arith.constant 0 : i32
    %c0_i32_1 = arith.constant 0 : i32
    return %c0_i32, %c0_i32_0 : i32, i32
  }
  func.func @transform_3(%arg0: i32) -> (i32, i32) {
    %c0_i32 = arith.constant 0 : i32
    %c0_i32_0 = arith.constant 0 : i32
    %c0_i32_1 = arith.constant 0 : i32
    return %c0_i32, %c0_i32_0 : i32, i32
  }
  func.func @transform_4(%arg0: i32) -> (i32, i32, i32) {
    %c0_i32 = arith.constant 0 : i32
    %c0_i32_0 = arith.constant 0 : i32
    %c0_i32_1 = arith.constant 0 : i32
    return %arg0, %c0_i32, %c0_i32_0 : i32, i32, i32
  }
  func.func @transform_5(%arg0: i32) -> (i32, i32) {
    %c0_i32 = arith.constant 0 : i32
    %c0_i32_0 = arith.constant 0 : i32
    %c0_i32_1 = arith.constant 0 : i32
    return %c0_i32, %c0_i32_0 : i32, i32
  }
  func.func @transform_6(%arg0: i32) -> (i32, i32) {
    %c0_i32 = arith.constant 0 : i32
    %c0_i32_0 = arith.constant 0 : i32
    %c0_i32_1 = arith.constant 0 : i32
    return %c0_i32, %c0_i32_0 : i32, i32
  }
  func.func @transform_7(%arg0: i32) -> (i32, i32, i32) {
    %c0_i32 = arith.constant 0 : i32
    %c0_i32_0 = arith.constant 0 : i32
    %c0_i32_1 = arith.constant 0 : i32
    return %arg0, %c0_i32, %c0_i32_0 : i32, i32, i32
  }
}

</mosaic_0001>

<bundles_post_ra>
// kernel: tpu_custom_call.1
= control target key start
LH: loop header
LB: loop body
LE: loop exit
PB: predicated region body
PF: predicated region fallthrough
CT: control target
= control target key end

     0   :  { %12 = vsyncpa [#allocation3], 0  ;;  %s1677_s0 = inlined_call_operand.vmem [shape: f32[2,8,32], index: 0, kind: input, shape index: {}]   ;;  %s1678_s1 = inlined_call_operand.vmem [shape: bf16[32,32], index: 1, kind: input, shape index: {}]   ;;  %s1679_s2 = inlined_call_operand.vmem [shape: f32[32,8], index: 2, kind: input, shape index: {}]   ;;  %s1680_s3 = inlined_call_operand.vmem [shape: f32[1,32], index: 3, kind: input, shape index: {}]   ;;  %s1681_s4 = inlined_call_operand.hbm [shape: f32[2,8,8], index: 4, kind: input, shape index: {}]   ;;  %s1682_s5 = inlined_call_operand.vmem [shape: bf16[32,32], index: 5, kind: input, shape index: {}]   ;;  %s1683_s6 = inlined_call_operand.vmem [shape: f32[1,32], index: 6, kind: input, shape index: {}]   ;;  %s1684_s7 = inlined_call_operand.hbm [shape: f32[2,8,32], index: 7, kind: output, shape index: {}]  }
   0x1   :  { %14 = vsyncpa [#allocation3 + $0x1], 0 }
   0x2   :  { %15 = vsyncpa [#allocation4], 0 }
   0x3   :  { %17 = vsyncpa [#allocation4 + $0x1], 0  ;;  %s1428_s24 = smov 0   ;;  %s1430_s25 = smov 0  }
   0x4   :  { %s1432_s26 = smov 0   ;;  %s1434_s27 = smov 0  }
   0x5 LB: > { %s1449_s28 = sadd.s32 4294967295, %s1368_s27   ;;  %s1087_s29 = sadd.s32 4294967294, %s1368_s27   ;;  %s1368_s27 = sphi %s1434_s27, %s1701_s27   ;;  %s1364_s26 = sphi %s1432_s26, %s1700_s26   ;;  %s1360_s25 = sphi %s1430_s25, %s1699_s25   ;;  %s1356_s24 = sphi %s1428_s24, %s1698_s24  }
   0x6   : > { %s1453_s30 = sadd.s32 1, %s1368_s27   ;;  %s119_s8 = sadd.s32 1, %s1364_s26 }
   0x7   : > { %s116_s9 = ssub.s32 %s1368_s27, %s1453_s30  ;;  %p126_p0 = scmp.ne.s32.totalorder %s1364_s26, %s1360_s25 }
   0x8   : > { %p117_p1 = scmp.eq.s32.totalorder %s116_s9, 0  ;;  %p127_p2 = scmp.eq.s32.totalorder %s1368_s27, 0 }
   0x9   : > { %p132_p3 = scmp.ne.s32.totalorder %s1360_s25, %s1356_s24  ;;  %p133_p4 = scmp.eq.s32.totalorder %s1449_s28, 0 }
   0xa   : > { %s1465_s10 = scalar_select %p117_p1, %s1364_s26, %s119_s8  }
   0xb   : > { %p1467_p5 = por %p127_p2, %p126_p0  ;;  %p1471_p6 = por %p133_p4, %p132_p3 }
   0xc   : > { %p198_p7 = scmp.eq.s32.totalorder %s1449_s28, 1  ;;  %p204_p8 = scmp.eq.s32.totalorder %s1087_s29, 1 }
   0xd   : > { %s1688_s12 = scalar_select %p1471_p6, 1, 0 }
   0xe   : > { %p1196_p10 = scmp.lt.s32.totalorder %s1368_s27, 2  ;;  %p1478_p11 = por %p198_p7, %p126_p0 }
   0xf   : > { %p1482_p12 = por %p204_p8, %p132_p3  ;;  %s246_s15 = sand.u32 1, %s1364_s26  }
  0x10   : > { %s1689_s13 = scalar_select %p1478_p11, 1, 0 }
  0x11   : > { %s1690_s14 = scalar_select %p1482_p12, 1, 0 }
  0x12   : > { %s1091_s16 = sshll.u32 %s1368_s27, 7  ;;  %s1090_s17 = sshll.u32 %s246_s15, 3 }
  0x13   : > { %s1491_s20 = scalar_lea.hbm %s1681_s4, %s1091_s16  ;;  %s250_s21 = scalar_lea.vmem [#allocation2], %s1090_s17 }
  0x14   : > { %s257_s22 = sshll.u32 %s250_s21, 4  ;;  %p1495_p13 = pnand %p1196_p10, %p1467_p5  ;;  %s1499_s22 = int_to_ptr.vmem [resolvable:$true] %s257_s22 }
  0x15   : > { %s247_s29 = scalar_lea.sflag [#allocation3], %s246_s15  ;;  %s1276_s8 = scalar_lea.hbm %s1491_s20, 128 }
  0x16   : > { %p1277_p2 = scmp.ne.s32.totalorder %s1491_s20, %s1276_s8  ;;  %p1278_p3 = pneg %p1495_p13 }
  0x17   : > { %s1281_s11 = scalar_lea.hbm %s1681_s4, 256  ;;  %p1282_p5 = scmp.lt.s32.totalorder %s1491_s20, %s1681_s4 }
  0x18   : > { %p1279_p4 = pnand %p1278_p3, %p1277_p2  ;;  %p1283_p8 = scmp.lt.s32.totalorder %s1281_s11, %s1276_s8 }
  0x1a   : > { %p1280_p7 = pneg %p1279_p4  ;;  %p1284_p10 = por %p1283_p8, %p1282_p5 }
  0x1c   : > { %p1285_p9 = pnand %p1284_p10, %p1280_p7 }
  0x1e   : > { %1288 = shalt.err (!%p1285_p9)
}
  0x1f   : > { %s1289_s15 = scalar_lea.vmem %s1499_s22, 128  ;;  %s1370_s19 = smov [#allocation2]  }
  0x20   : > { %p1290_p0 = scmp.ne.s32.totalorder %s1499_s22, %s1289_s15  ;;  %s1294_s21 = sshll.u32 %s1370_s19, 4  ;;  %s1295_s21 = int_to_ptr.vmem [resolvable:$false] %s1294_s21 }
  0x21   : > { %s1296_s9 = scalar_lea.vmem %s1295_s21, 256  ;;  %p1297_p4 = scmp.lt.s32.totalorder %s1499_s22, %s1295_s21 }
  0x22   : > { %p1292_p1 = pnand %p1290_p0, %p1278_p3  ;;  %p1298_p12 = scmp.lt.s32.totalorder %s1296_s9, %s1289_s15 }
  0x24   : > { %p1293_p2 = pneg %p1292_p1  ;;  %p1299_p11 = por %p1298_p12, %p1297_p4 }
  0x26   : > { %p1300_p6 = pnand %p1299_p11, %p1293_p2 }
  0x28   : > { %1303 = shalt.err (!%p1300_p6)
}
  0x29   : > { %1191 = dma.hbm_to_vmem [thread:$0]  (!%p1495_p13), %s1491_s20, 128, %s1499_s22, %s247_s29  }
  0x2a   : > { %p1692_p9 = scmp.lt.s32.totalorder %s1368_s27, 3  ;;  %p1693_p7 = scmp.ge.s32.totalorder %s1368_s27, 1 }
  0x2c   : > { %p263_p0 = pnand %p1693_p7, %p1692_p9 }
  0x2d   : > { %s1526_s8 = sand.u32 (!%p263_p0), 1, %s1360_s25   ;;  %p1694_p6 = scmp.ne.s32.totalorder (!%p263_p0), %s1688_s12, 0 }
  0x2e   : > { %266 = sbr.rel (%p263_p0) target bundleno = 1384 (0x568), region = 48  ;;  %s1093_s16 = sshll.u32 (!%p263_p0), %s1526_s8, 3 }
  0x2f   : > { %s269_s11 = scalar_lea.sflag (!%p263_p0), [#allocation3], %s1526_s8  ;;  %s1532_s23 = scalar_lea.vmem (!%p263_p0), [#allocation2], %s1093_s16 }
  0x33   : > { %1347 = dma.done.wait (%p1694_p6), %s269_s11, 128  }
  0x34   : > { %1349 = vsyncadd (%p1694_p6), %s269_s11, 4294967168  ;;  %p307_p11 = scmp.lt.s32.totalorder %s1449_s28, 1  ;;  %v1371_v0 = vmov 0.0   ;;  %vm1372_vm0 = vmmov 0   ;;  %v1250_v1 = vld [vmem:[%s1678_s1 + $0x8] sm:$0xff]   ;;  %v1251_v2 = vld [vmem:[%s1678_s1] sm:$0xff]   ;;  %v494_v26 = vlaneseq }
  0x35   : > { %1133 = vmatprep.subr.bf16.mxu0 %v1371_v0  ;;  %1137 = vmatprep.mubr.msk.bf16.mxu0 %vm1372_vm0, %v1371_v0  ;;  %vm331_vm1 = vcmask 261120   ;;  %v379_v5 = vld [vmem:[%s1679_s2 + $0x18] sm:$0xff]  ;;  %v378_v6 = vld [vmem:[%s1679_s2 + $0x10] sm:$0xff]  ;;  %v377_v7 = vld [vmem:[%s1679_s2 + $0x8] sm:$0xff]  ;;  %vm520_vm2 = vcmask 1043456   ;;  %v1373_v16 = vmov 1  }
  0x36   : > { %s308_s20 = scalar_select %p307_p11, %s1449_s28, 1  ;;  %1141 = vmatprep.subr.mxu1 %v1371_v0  ;;  %1149 = vmatprep.mubr.msk.f32.mxu1 %vm1372_vm0, %v1371_v0  ;;  %v376_v8 = vld [vmem:[%s1679_s2] sm:$0xff]  ;;  %v1374_v17 = vmov 0   ;;  %v1379_v20 = vmov 2   ;;  %v1380_v21 = vmov 3   ;;  %v495_v28 = vshrl.u32 %v494_v26, 7 }
  0x37   : > { %1134 = vmatpush3.bf16.msra.mxu0 %v1250_v1  ;;  %1142 = vmatpush3.msra.mxu1 %v379_v5  ;;  %s1375_s15 = smov 122   ;;  %s1376_s19 = smov 124   ;;  %v313_v35 = vld [vmem:[%s1532_s23] sm:$0xff]  ;;  %vm503_vm5 = vcmask 64512   ;;  %vm902_vm9 = vcmask 130048   ;;  %vm904_vm10 = vcmask 195584  }
  0x38   : > { %s1095_s22 = sshll.u32 %s308_s20, 3  ;;  %1135 = vmatprep.subr.bf16.mxu0 %v1371_v0  ;;  %1143 = vmatprep.subr.mxu1 %v1371_v0  ;;  %s1377_s21 = smov 121   ;;  %v496_v31 = vsub.s32 0, %v495_v28  ;;  %vm453_vm3 = vcmp.eq.f32.partialorder %v313_v35, 1.0 }
  0x39   : > { %s310_s17 = scalar_lea.vmem %s1677_s0, %s1095_s22  ;;  %1144 = vmatpush3.msra.mxu1 %v378_v6  ;;  %1247 = vset.pattern.permute.xlu1 %v1373_v16  ;;  %s1378_s9 = smov 123  }
  0x3a   : > { %v1555_v3 = vld [vmem:[%s310_s17] sm:$0xff]  ;;  %1145 = vmatprep.subr.mxu1 %v1371_v0  ;;  %1246 = vset.pattern.permute.xlu0 %v1374_v17  ;;  %s1381_s23 = smov 120   ;;  %s1382_s11 = smov 104  }
  0x3b   : > { %v1560_v4 = vpack.c.bf16 %v1555_v3, %v1555_v3  ;;  %1136 = vmatpush3.bf16.msra.mxu0 %v1251_v2  ;;  %1146 = vmatpush3.msra.mxu1 %v377_v7  ;;  %s1383_s20 = smov 112   ;;  %s1384_s18 = smov 8  }
  0x3c   : > { %1158 = vmatprep.subr.bf16.mxu0 %v1371_v0  ;;  %1147 = vmatprep.subr.mxu1 %v1371_v0  ;;  %s306_s22 = scalar_lea.vmem [#allocation5], %s1093_s16  ;;  %p1695_p13 = scmp.ne.s32.totalorder %s1689_s13, 0 }
  0x3d   : > { %1148 = vmatpush3.msra.mxu1 %v376_v8  ;;  %s1005_s29 = sshll.u32 %s306_s22, 4  ;;  %s1006_s29 = int_to_ptr.vmem [resolvable:$true] %s1005_s29 }
  0x3e   : > { %1138 = vmatmul.mubr.msk.bf16.vlgmr.msra.gmra.mxu0 %vm331_vm1, %v1560_v4  ;;  %1152 = vmatprep.subr.bf16.mxu1 %v1371_v0 }
  0x3f   : > { %1160 = vmatprep.mubr.msk.bf16.mxu0 %vm1372_vm0, %v1371_v0 }
  0xfe   : > { %v369_v9 = vpop.f32.mrf.mxu0 }
  0xff   : > { %1254 = vtanh.f32 %v369_v9  ;;  %v1583_v13 = vpack.c.bf16 %v369_v9, %v369_v9 }
 0x100   : > { %v1139_v10 = vpop.f32.mrf.mxu0 }
 0x101   : > { %v522_v15 = vsel %vm520_vm2, %v1583_v13, 0 }
 0x102   : > { %v372_v11 = vpop.f32.mrf.mxu0 }
 0x104   : > { %v1140_v12 = vpop.f32.mrf.mxu0 }
 0x10c   : > { %v1255_v14 = vpop.eup %1254 }
 0x10d   : > { %1150 = vmatmul.mubr.msk.f32.vlgmr.msra.gmra.mxu1 %vm331_vm1, %v1255_v14 }
 0x10e   : > { %1153 = vmatpush3.bf16.msra.mxu1 %v522_v15  ;;  %1154 = vmatprep.mubr.msk.bf16.mxu1 %vm1372_vm0, %v1371_v0 }
 0x10f   : > { %1164 = vmatprep.subr.bf16.mxu1 %v1371_v0 }
 0x1cd   : > { %v449_v18 = vpop.f32.mrf.mxu1 }
 0x1ce   : > { %673 = vrot.lane.b32.xlu1 %v449_v18, %s1375_s15  ;;  %455 = vrot.lane.b32.xlu0 %v449_v18, %s1376_s19  ;;  %s1385_s15 = smov 16   ;;  %s1386_s19 = smov 24  }
 0x1cf   : > { %v1151_v19 = vpop.f32.mrf.mxu1 }
 0x1d2   : > { %781 = vrot.lane.b32.xlu1 %v449_v18, %s1377_s21  ;;  %564 = vrot.lane.b32.xlu0 %v449_v18, %s1378_s9  ;;  %s1387_s21 = smov [#allocation5]  }
 0x1d6   : > { %600 = vperm.xlu1 %1247, %v449_v18   ;;  %491 = vperm.xlu0 %1246, %v449_v18  }
 0x1da   : > { %1248 = vset.pattern.permute.xlu1 %v1379_v20  ;;  %1249 = vset.pattern.permute.xlu0 %v1380_v21 }
 0x1db   : > { %709 = vperm.xlu1 %1248, %v449_v18   ;;  %817 = vperm.xlu0 %1249, %v449_v18  }
 0x240   : > { %v674_v22 = vpop.permute.xlu1 %673  ;;  %v456_v23 = vpop.permute.xlu0 %455 }
 0x241   : > { %458 = vxpose.xlu1.b32.start.end [1/1] (short) (narrow) %v456_v23, 8 }
 0x244   : > { %v782_v24 = vpop.permute.xlu1 %781  ;;  %v565_v25 = vpop.permute.xlu0 %564 }
 0x245   : > { %784 = vxpose.xlu1.b32.start.end [1/1] (short) (narrow) %v782_v24, 8  ;;  %567 = vxpose.xlu0.b32.start.end [1/1] (short) (narrow) %v565_v25, 8 }
 0x249   : > { %676 = vxpose.xlu0.b32.start.end [1/1] (short) (narrow) %v674_v22, 8 }
 0x251   : > { %v601_v27 = vpop.permute.xlu1 %600  ;;  %v492_v29 = vpop.permute.xlu0 %491 }
 0x256   : > { %v710_v30 = vpop.permute.xlu1 %709  ;;  %v818_v32 = vpop.permute.xlu0 %817 }
 0x2bd   : > { %v474_v33 = vpop.trf.xlu1 }
 0x2be   : > { %v497_v34 = vrot.slane %v474_v33, %v496_v31 }
 0x2c0   : > { %v498_v36 = vadd.f32 %v497_v34, %v492_v29 }
 0x2c1   : > { %v800_v37 = vpop.trf.xlu1  ;;  %v583_v38 = vpop.trf.xlu0 }
 0x2c2   : > { %v823_v39 = vrot.slane %v800_v37, %v496_v31  ;;  %v606_v40 = vrot.slane %v583_v38, %v496_v31  ;;  %vm499_vm4 = vcmp.gt.f32.partialorder %v498_v36, 0.0  ;;  %v500_v41 = vmul.f32 0.2, %v498_v36 }
 0x2c4   : > { %v824_v42 = vadd.f32 %v823_v39, %v818_v32  ;;  %v607_v43 = vadd.f32 %v606_v40, %v601_v27  ;;  %v501_v44 = vsel %vm499_vm4, %v498_v36, %v500_v41  ;;  %v1252_v40 = vld [vmem:[%s1682_s5 + $0x8] sm:$0xff]  }
 0x2c5   : > { %v692_v45 = vpop.trf.xlu0  ;;  %v502_v46 = vsel %vm453_vm3, %v501_v44, -999.0 }
 0x2c6   : > { %v715_v47 = vrot.slane %v692_v45, %v496_v31  ;;  %v504_v48 = vsel %vm503_vm5, %v502_v46, -inf  ;;  %vm825_vm6 = vcmp.gt.f32.partialorder %v824_v42, 0.0  ;;  %v826_v49 = vmul.f32 0.2, %v824_v42 }
 0x2c7   : > { %505 = vmax.xlane.f32.xlu0 %v504_v48  ;;  %vm608_vm7 = vcmp.gt.f32.partialorder %v607_v43, 0.0  ;;  %v609_v50 = vmul.f32 0.2, %v607_v43 }
 0x2c8   : > { %v716_v51 = vadd.f32 %v715_v47, %v710_v30  ;;  %v827_v52 = vsel %vm825_vm6, %v824_v42, %v826_v49 }
 0x2c9   : > { %v828_v53 = vsel %vm453_vm3, %v827_v52, -999.0  ;;  %v610_v54 = vsel %vm608_vm7, %v607_v43, %v609_v50  ;;  %v1253_v43 = vld [vmem:[%s1682_s5] sm:$0xff]  }
 0x2ca   : > { %v829_v55 = vsel %vm503_vm5, %v828_v53, -inf  ;;  %v611_v56 = vsel %vm453_vm3, %v610_v54, -999.0  ;;  %vm717_vm8 = vcmp.gt.f32.partialorder %v716_v51, 0.0  ;;  %v718_v57 = vmul.f32 0.2, %v716_v51 }
 0x2cb   : > { %830 = vmax.xlane.f32.xlu0 %v829_v55  ;;  %v612_v58 = vsel %vm503_vm5, %v611_v56, -inf }
 0x2cc   : > { %613 = vmax.xlane.f32.xlu1 %v612_v58  ;;  %v719_v59 = vsel %vm717_vm8, %v716_v51, %v718_v57 }
 0x2cd   : > { %v720_v60 = vsel %vm453_vm3, %v719_v59, -999.0 }
 0x2ce   : > { %v721_v61 = vsel %vm503_vm5, %v720_v60, -inf }
 0x2d0   : > { %722 = vmax.xlane.f32.xlu1 %v721_v61 }
 0x2e1   : > { %625 = vrot.lane.b32.xlu1 %v1583_v13, %s1381_s23 }
 0x350   : > { %v506_v62 = vpop.xlane.xlu0 %505 }
 0x351   : > { %v507_v63 = vsub.f32 %v502_v46, %v506_v62 }
 0x353   : > { %v508_v1 = vmul.f32 1.442695, %v507_v63  ;;  %v1105_v63 = vld [vmem:[%s1683_s6] ss:$0 sm:$0xff] }
 0x354   : > { %v831_v2 = vpop.xlane.xlu0 %830 }
 0x355   : > { %1256 = vpow2.f32 %v508_v1  ;;  %v614_v5 = vpop.xlane.xlu1 %613  ;;  %v832_v6 = vsub.f32 %v828_v53, %v831_v2 }
 0x356   : > { %v615_v7 = vsub.f32 %v611_v56, %v614_v5 }
 0x357   : > { %v833_v9 = vmul.f32 1.442695, %v832_v6 }
 0x358   : > { %v616_v8 = vmul.f32 1.442695, %v615_v7 }
 0x359   : > { %v723_v10 = vpop.xlane.xlu1 %722 }
 0x35a   : > { %1258 = vpow2.f32 %v616_v8  ;;  %v724_v11 = vsub.f32 %v720_v60, %v723_v10  ;;  %v1104_v8 = vld [vmem:[%s1680_s3] ss:$0 sm:$0xff] }
 0x35b   : > { %1260 = vpow2.f32 %v833_v9 }
 0x35c   : > { %v725_v12 = vmul.f32 1.442695, %v724_v11 }
 0x35d   : > { %v626_v14 = vpop.permute.xlu1 %625 }
 0x35e   : > { %1262 = vpow2.f32 %v725_v12  ;;  %v631_v15 = vsel %vm520_vm2, %v626_v14, 0 }
 0x35f   : > { %1159 = vmatpush3.bf16.msra.mxu0 %v631_v15 }
 0x360   : > { %1170 = vmatprep.subr.bf16.mxu0 %v1371_v0 }
 0x362   : > { %v1257_v16 = vpop.eup %1256 }
 0x363   : > { %v510_v17 = vsel %vm503_vm5, %v1257_v16, 0.0 }
 0x364   : > { %511 = vadd.xlane.f32.xlu1 %v510_v17 }
 0x367   : > { %v1259_v18 = vpop.eup %1258 }
 0x368   : > { %v618_v19 = vsel %vm503_vm5, %v1259_v18, 0.0  ;;  %v1261_v20 = vpop.eup %1260 }
 0x369   : > { %619 = vadd.xlane.f32.xlu0 %v618_v19  ;;  %v835_v23 = vsel %vm503_vm5, %v1261_v20, 0.0 }
 0x36b   : > { %v1263_v21 = vpop.eup %1262 }
 0x36c   : > { %v727_v22 = vsel %vm503_vm5, %v1263_v21, 0.0 }
 0x36d   : > { %728 = vadd.xlane.f32.xlu1 %v727_v22  ;;  %836 = vadd.xlane.f32.xlu0 %v835_v23 }
 0x37e   : > { %841 = vrot.lane.b32.xlu1 %v1583_v13, %s1382_s11 }
 0x383   : > { %733 = vrot.lane.b32.xlu0 %v1583_v13, %s1383_s20  ;;  %s1111_s20 = sshll.u32 %s1449_s28, 7  ;;  %s1308_s28 = sshll.u32 %s1387_s21, 4  ;;  %s1309_s28 = int_to_ptr.vmem [resolvable:$false] %s1308_s28 }
 0x384   : > { %s1310_s16 = scalar_lea.vmem %s1309_s28, 256  ;;  %p1311_p5 = scmp.lt.s32.totalorder %s1006_s29, %s1309_s28 }
 0x3ed   : > { %v512_v24 = vpop.xlane.xlu1 %511 }
 0x3ee   : > { %1264 = vrcp.f32 %v512_v24 }
 0x3f2   : > { %v620_v25 = vpop.xlane.xlu0 %619 }
 0x3f3   : > { %1266 = vrcp.f32 %v620_v25 }
 0x3f6   : > { %v729_v26 = vpop.xlane.xlu1 %728  ;;  %v837_v27 = vpop.xlane.xlu0 %836 }
 0x3f7   : > { %1268 = vrcp.f32 %v729_v26 }
 0x3f8   : > { %1270 = vrcp.f32 %v837_v27 }
 0x3fa   : > { %v734_v30 = vpop.permute.xlu0 %733  ;;  %v842_v13 = vpop.permute.xlu1 %841 }
 0x3fb   : > { %v1265_v28 = vpop.eup %1264  ;;  %v739_v33 = vsel %vm520_vm2, %v734_v30, 0  ;;  %v847_v38 = vsel %vm520_vm2, %v842_v13, 0 }
 0x3fc   : > { %v514_v29 = vmul.f32 %v1265_v28, %v1257_v16 }
 0x3fe   : > { %v515_v31 = vpack.c.bf16 %v514_v29, %v514_v29 }
 0x400   : > { %v1267_v32 = vpop.eup %1266  ;;  %1155 = vmatmul.mubr.msk.bf16.vlgmr.msra.gmra.mxu1 %vm503_vm5, %v515_v31 }
 0x401   : > { %1165 = vmatpush3.bf16.msra.mxu1 %v739_v33  ;;  %v622_v34 = vmul.f32 %v1267_v32, %v1259_v18  ;;  %1166 = vmatprep.mubr.msk.bf16.mxu1 %vm1372_vm0, %v1371_v0 }
 0x402   : > { %1176 = vmatprep.subr.bf16.mxu1 %v1371_v0 }
 0x403   : > { %v623_v35 = vpack.c.bf16 %v622_v34, %v622_v34 }
 0x404   : > { %v1269_v36 = vpop.eup %1268 }
 0x405   : > { %v1271_v37 = vpop.eup %1270  ;;  %1161 = vmatmul.mubr.msk.bf16.vlgmr.msra.gmra.mxu0 %vm503_vm5, %v623_v35  ;;  %v731_v39 = vmul.f32 %v1269_v36, %v1263_v21 }
 0x406   : > { %1171 = vmatpush3.bf16.msra.mxu0 %v847_v38  ;;  %1172 = vmatprep.mubr.msk.bf16.mxu0 %vm1372_vm0, %v1371_v0  ;;  %v839_v42 = vmul.f32 %v1271_v37, %v1261_v20 }
 0x407   : > { %v732_v41 = vpack.c.bf16 %v731_v39, %v731_v39 }
 0x408   : > { %v840_v44 = vpack.c.bf16 %v839_v42, %v839_v42 }
 0x409   : > { %1167 = vmatmul.mubr.msk.bf16.vlgmr.msra.gmra.mxu1 %vm503_vm5, %v732_v41 }
 0x40a   : > { %1177 = vmatpush3.bf16.msra.mxu1 %v1252_v40  ;;  %1180 = vmatprep.mubr.msk.bf16.mxu1 %vm1372_vm0, %v1371_v0 }
 0x40b   : > { %1178 = vmatprep.subr.bf16.mxu1 %v1371_v0 }
 0x40d   : > { %1173 = vmatmul.mubr.msk.bf16.vlgmr.msra.gmra.mxu0 %vm503_vm5, %v840_v44 }
 0x40e   : > { %1179 = vmatpush3.bf16.msra.mxu1 %v1253_v43 }
 0x411   : > { %1181 = vmatmul.mubr.msk.bf16.vlgmr.msra.gmra.mxu1 %vm331_vm1, %v1560_v4 }
 0x4c0   : > { %v558_v45 = vpop.f32.mrf.mxu1 }
 0x4c2   : > { %v1156_v46 = vpop.f32.mrf.mxu1 }
 0x4c4   : > { %v561_v47 = vpop.f32.mrf.mxu1 }
 0x4c5   : > { %v667_v48 = vpop.f32.mrf.mxu0 }
 0x4c6   : > { %890 = vrot.lane.b32.xlu1 %v667_v48, %s1384_s18  ;;  %v1157_v49 = vpop.f32.mrf.mxu1  ;;  %s1003_s18 = scalar_lea.hbm %s1684_s7, %s1111_s20 }
 0x4c7   : > { %v1162_v50 = vpop.f32.mrf.mxu0 }
 0x4c9   : > { %v670_v51 = vpop.f32.mrf.mxu0  ;;  %v775_v52 = vpop.f32.mrf.mxu1 }
 0x4ca   : > { %894 = vrot.lane.b32.xlu0 %v775_v52, %s1385_s15  ;;  %s992_s15 = scalar_lea.sflag [#allocation4], %s1526_s8 }
 0x4cb   : > { %v1163_v53 = vpop.f32.mrf.mxu0  ;;  %v1168_v0 = vpop.f32.mrf.mxu1 }
 0x4cd   : > { %v778_v54 = vpop.f32.mrf.mxu1  ;;  %v883_v55 = vpop.f32.mrf.mxu0 }
 0x4ce   : > { %898 = vrot.lane.b32.xlu1 %v883_v55, %s1386_s19  ;;  %s1304_s19 = scalar_lea.vmem %s1006_s29, 128 }
 0x4cf   : > { %v1169_v56 = vpop.f32.mrf.mxu1  ;;  %v1174_v4 = vpop.f32.mrf.mxu0  ;;  %p1305_p12 = scmp.ne.s32.totalorder %s1006_s29, %s1304_s19  ;;  %p1312_p8 = scmp.lt.s32.totalorder %s1310_s16, %s1304_s19 }
 0x4d1   : > { %v886_v57 = vpop.f32.mrf.mxu0  ;;  %v971_v58 = vpop.f32.mrf.mxu1  ;;  %p1306_p1 = pnand %p1305_p12, %p1695_p13  ;;  %p1313_p10 = por %p1312_p8, %p1311_p5 }
 0x4d2   : > { %v972_v1 = vadd.f32 %v1105_v63, %v971_v58 }
 0x4d3   : > { %v1175_v59 = vpop.f32.mrf.mxu0  ;;  %v1182_v60 = vpop.f32.mrf.mxu1  ;;  %p1307_p3 = pneg %p1306_p1 }
 0x4d4   : > { %v977_v2 = vmul.f32 0.5, %v972_v1 }
 0x4d5   : > { %v974_v61 = vpop.f32.mrf.mxu1  ;;  %p1314_p2 = pnand %p1313_p10, %p1307_p3 }
 0x4d6   : > { %1272 = vtanh.f32 %v977_v2 }
 0x4d7   : > { %v1183_v62 = vpop.f32.mrf.mxu1 }
 0x4e3   : > { %v1273_v15 = vpop.eup %1272 }
 0x4e4   : > { %v979_v16 = vadd.f32 1.0, %v1273_v15 }
 0x4e6   : > { %v980_v17 = vmul.f32 0.5, %v979_v16 }
 0x4e8   : > { %v987_v18 = vsub.f32 1.0, %v980_v17 }
 0x4ea   : > { %v988_v21 = vmul.f32 %v987_v18, %v1555_v3 }
 0x538   : > { %v891_v5 = vpop.permute.xlu1 %890 }
 0x539   : > { %v901_v7 = vsel %vm503_vm5, %v558_v45, %v891_v5 }
 0x53c   : > { %v895_v6 = vpop.permute.xlu0 %894 }
 0x53d   : > { %v903_v9 = vsel %vm902_vm9, %v901_v7, %v895_v6 }
 0x540   : > { %v899_v10 = vpop.permute.xlu1 %898 }
 0x541   : > { %v905_v11 = vsel %vm904_vm10, %v903_v9, %v899_v10 }
 0x542   : > { %v913_v12 = vadd.f32 %v1104_v8, %v905_v11 }
 0x544   : > { %v982_v14 = vmul.f32 1.442695, %v913_v12  ;;  %vm981_vm11 = vcmp.gt.f32.partialorder %v913_v12, 0.0 }
 0x546   : > { %1274 = vpow2.f32 %v982_v14 }
 0x553   : > { %v1275_v19 = vpop.eup %1274 }
 0x554   : > { %v1109_v20 = vadd.f32 -1.0, %v1275_v19 }
 0x556   : > { %v985_v22 = vsel %vm981_vm11, %v913_v12, %v1109_v20 }
 0x557   : > { %v986_v23 = vmul.f32 %v985_v22, %v980_v17 }
 0x559   : > { %v989_v24 = vadd.f32 %v988_v21, %v986_v23 }
 0x55b   : > { %990 = vst.msk [vmem:[%s306_s22] sm:$0xff] %vm331_vm1, %v989_v24 }
 0x55c   : > { %1317 = shalt.err (!%p1314_p2)
}
 0x55d   : > { %s1318_s9 = scalar_lea.hbm %s1003_s18, 128  ;;  %s1322_s11 = scalar_lea.hbm %s1684_s7, 256 }
 0x55e   : > { %p1319_p4 = scmp.ne.s32.totalorder %s1003_s18, %s1318_s9  ;;  %p1323_p0 = scmp.lt.s32.totalorder %s1003_s18, %s1684_s7 }
 0x55f   : > { %p1324_p6 = scmp.lt.s32.totalorder %s1322_s11, %s1318_s9 }
 0x560   : > { %p1320_p9 = pnand %p1319_p4, %p1695_p13 }
 0x561   : > { %p1325_p11 = por %p1324_p6, %p1323_p0 }
 0x562   : > { %p1321_p7 = pneg %p1320_p9 }
 0x564   : > { %p1326_p12 = pnand %p1325_p11, %p1321_p7 }
 0x566   : > { %1329 = shalt.err (!%p1326_p12)
}
 0x567   : > { %1186 = dma.vmem_to_hbm [thread:$0]  (%p1695_p13), %s1006_s29, 128, %s1003_s18, %s992_s15  }
 0x568 PF: > { %s1017_s12 = sand.u32 1, %s1356_s24   ;;  %p1696_p1 = scmp.ne.s32.totalorder %s1690_s14, 0 }
 0x569   : > { %p1697_p3 = scmp.ge.s32.totalorder %s1368_s27, 2  ;;  %s1018_s17 = scalar_lea.sflag [#allocation4], %s1017_s12 }
 0x56b   : > { %p1193_p5 = pnand %p1697_p3, %p1696_p1 }
 0x56d   : > { %p1194_p8 = pneg %p1193_p5 }
 0x56f   : > { %1351 = dma.done.wait (%p1194_p8), %s1018_s17, 128  }
 0x570   : > { %1353 = vsyncadd (%p1194_p8), %s1018_s17, 4294967168  ;;  %p20_p10 = scmp.ge.s32.totalorder %s1453_s30, 4   ;;  %s1698_s24 = smov %s1360_s25 }
 0x571   : > { %s1699_s25 = smov %s1364_s26  ;;  %s1700_s26 = smov %s1465_s10 }
 0x572   : > { %s1701_s27 = smov %s1453_s30  ;;  %22 = sbr.rel (!%p20_p10) target bundleno = 5 (0x5), region = 96 }
 0x577   :  { %1023 = vsyncpa [#allocation3], 1 }
 0x578   :  { %1025 = vsyncpa [#allocation3 + $0x1], 1 }
 0x579   :  { %1026 = vsyncpa [#allocation4], 1 }
 0x57a   :  { %1028 = vsyncpa [#allocation4 + $0x1], 1 }

</bundles_post_ra>
